<compile_context>
chip_gen: v7x
topology: tpu7x:2x2x1
jax: 0.10.0
libtpu: 0.0.40
codegen_flags: <defaults>
</compile_context>

<pallas_src>
import jax
import jax.numpy as jnp
from jax.experimental import pallas as pl
from jax.experimental.pallas import tpu as pltpu

BN_EPS = 1e-5
LANE = 128
TILE_M_MAX = 512


def _round_up(a, b):
    return (a + b - 1) // b * b


def _matmul_stats_kernel(p_ref, w_ref, y_ref, ysum_ref, ysq_ref):
    # p: (TILE_M, K_pad) bf16, w: (K_pad, C_pad) bf16 -> y: (TILE_M, C_pad) f32
    y = jnp.dot(p_ref[...], w_ref[...], preferred_element_type=jnp.float32)
    y_ref[...] = y

    # Per-channel partial sum / sum-of-squares via the MXU (ones @ y), keeping the
    # XLU free; the 8 result rows are identical, wrapper reads row 0.
    tm = y.shape[0]
    ones = jnp.ones((8, tm), jnp.float32)
    ysum_ref[...] = jnp.dot(ones, y, preferred_element_type=jnp.float32)
    ysq_ref[...] = jnp.dot(ones, y * y, preferred_element_type=jnp.float32)


def _bn_relu_kernel(y_ref, scale_ref, shift_ref, out_ref):
    # Fused BatchNorm (precomputed per-channel scale/shift) + ReLU.
    out_ref[...] = jnp.maximum(y_ref[...] * scale_ref[...] + shift_ref[...], 0.0)


def conv_block_forward(x, weight, bias, gamma, beta, stride=2, padding=1):
    """x: (N,Cin,H,W) f32, weight: (Cout,Cin,KH,KW), bias/gamma/beta: (Cout,).

    `bias` is accepted for API parity but unused: with training-mode BatchNorm the
    per-channel conv bias is exactly cancelled by the mean subtraction.
    """
    del bias
    N, Cin, H, W = x.shape
    Cout, _, KH, KW = weight.shape
    OH = (H + 2 * padding - KH) // stride + 1
    OW = (W + 2 * padding - KW) // stride + 1
    M = N * OH * OW
    K = Cin * KH * KW

    # ---- glue: channels-last im2col (single small NCHW->NHWC transpose) ----
    xp = jnp.pad(x, ((0, 0), (0, 0), (padding, padding), (padding, padding)))
    xp = jnp.transpose(xp, (0, 2, 3, 1))                           # (N, Hp, Wp, Cin)
    cols = []
    for kh in range(KH):
        for kw in range(KW):
            cols.append(xp[:, kh:kh + stride * OH:stride,
                            kw:kw + stride * OW:stride, :])        # (N, OH, OW, Cin)
    patches = jnp.concatenate(cols, axis=-1).reshape(M, K)         # cols = (kh, kw, cin)
    # TODO(synk): for large inputs, gather the KHxKW taps inside the kernel from HBM
    # (memory_space=pl.ANY + manual DMA) so the patches matrix is never materialized.

    # Weight columns reordered to the same (kh, kw, cin) layout.
    w2 = jnp.transpose(weight, (0, 2, 3, 1)).reshape(Cout, K).T    # (K, Cout)

    # ---- pad to lane-dense / MXU-friendly shapes ----
    K_pad = _round_up(K, LANE)
    C_pad = _round_up(Cout, LANE)
    tile_m = min(TILE_M_MAX, _round_up(M, 8))
    M_pad = _round_up(M, tile_m)
    grid_m = M_pad // tile_m

    patches_p = jnp.pad(patches, ((0, M_pad - M), (0, K_pad - K))).astype(jnp.bfloat16)
    w_p = jnp.pad(w2, ((0, K_pad - K), (0, C_pad - Cout))).astype(jnp.bfloat16)
    gamma_p = jnp.pad(gamma.astype(jnp.float32), (0, C_pad - Cout))
    beta_p = jnp.pad(beta.astype(jnp.float32), (0, C_pad - Cout))

    cparams = pltpu.CompilerParams(
        dimension_semantics=("parallel",),          # megacore sharding on v7x
        vmem_limit_bytes=32 * 1024 * 1024,          # safe on v5e/v6e/v7x scoped VMEM
    )

    # ---- pass 1: conv-as-matmul + per-tile channel statistics ----
    cost1 = pl.CostEstimate(
        flops=2 * M_pad * K_pad * C_pad + 4 * 8 * M_pad * C_pad,
        transcendentals=0,
        bytes_accessed=(M_pad * K_pad * 2 + K_pad * C_pad * 2
                        + M_pad * C_pad * 4 + 2 * grid_m * 8 * C_pad * 4),
    )
    y, ysum, ysq = pl.pallas_call(
        _matmul_stats_kernel,
        out_shape=(
            jax.ShapeDtypeStruct((M_pad, C_pad), jnp.float32),
            jax.ShapeDtypeStruct((grid_m * 8, C_pad), jnp.float32),
            jax.ShapeDtypeStruct((grid_m * 8, C_pad), jnp.float32),
        ),
        grid_spec=pltpu.PrefetchScalarGridSpec(
            num_scalar_prefetch=0,
            grid=(grid_m,),
            in_specs=[
                pl.BlockSpec((tile_m, K_pad), lambda i: (i, 0)),
                pl.BlockSpec((K_pad, C_pad), lambda i: (0, 0)),
            ],
            out_specs=[
                pl.BlockSpec((tile_m, C_pad), lambda i: (i, 0)),
                pl.BlockSpec((8, C_pad), lambda i: (i, 0)),
                pl.BlockSpec((8, C_pad), lambda i: (i, 0)),
            ],
        ),
        compiler_params=cparams,
        cost_estimate=cost1,
    )(patches_p, w_p)

    # ---- finalize BN stats (tiny, plain JAX): fused per-channel scale / shift ----
    ch_sum = ysum.reshape(grid_m, 8, C_pad)[:, 0, :].sum(axis=0)   # (C_pad,)
    ch_sq = ysq.reshape(grid_m, 8, C_pad)[:, 0, :].sum(axis=0)
    mean = ch_sum / M                       # true M: zero-padded rows contribute 0
    var = jnp.maximum(ch_sq / M - mean * mean, 0.0)
    scale = gamma_p * jax.lax.rsqrt(var + BN_EPS)
    shift = beta_p - mean * scale
    scale2 = scale.reshape(1, C_pad)
    shift2 = shift.reshape(1, C_pad)

    # ---- pass 2: y * scale + shift, ReLU (lane-dense f32 output) ----
    out2d = pl.pallas_call(
        _bn_relu_kernel,
        out_shape=jax.ShapeDtypeStruct((M_pad, C_pad), jnp.float32),
        grid_spec=pltpu.PrefetchScalarGridSpec(
            num_scalar_prefetch=0,
            grid=(grid_m,),
            in_specs=[
                pl.BlockSpec((tile_m, C_pad), lambda i: (i, 0)),
                pl.BlockSpec((1, C_pad), lambda i: (0, 0)),
                pl.BlockSpec((1, C_pad), lambda i: (0, 0)),
            ],
            out_specs=pl.BlockSpec((tile_m, C_pad), lambda i: (i, 0)),
        ),
        compiler_params=cparams,
    )(y, scale2, shift2)

    # Slice off padding; return NCHW to match the PyTorch module (chained ConvBlocks
    # could stay NHWC and skip this transpose).
    out = out2d[:M, :Cout].reshape(N, OH, OW, Cout)
    return jnp.transpose(out, (0, 3, 1, 2))


def _reference(x, weight, bias, gamma, beta, stride=2, padding=1):
    """Pure-JAX f32 reference of the same forward pass (includes the conv bias)."""
    y = jax.lax.conv_general_dilated(
        x, weight, window_strides=(stride, stride),
        padding=[(padding, padding), (padding, padding)],
        dimension_numbers=("NCHW", "OIHW", "NCHW"))
    y = y + bias.reshape(1, -1, 1, 1)
    mean = jnp.mean(y, axis=(0, 2, 3), keepdims=True)
    var = jnp.mean((y - mean) ** 2, axis=(0, 2, 3), keepdims=True)
    y = (y - mean) * jax.lax.rsqrt(var + BN_EPS)
    y = gamma.reshape(1, -1, 1, 1) * y + beta.reshape(1, -1, 1, 1)
    return jnp.maximum(y, 0.0)


if __name__ == "__main__":
    # ConvBlock(input_size=4, output_size=8, kernel_size=4, stride=2, padding=1,
    #           bias=True, activation='relu', norm='batch')
    N, Cin, H, W = 2, 4, 16, 16
    Cout, KH, KW = 8, 4, 4

    key = jax.random.PRNGKey(0)
    kx, kw, kb = jax.random.split(key, 3)
    x = jax.random.normal(kx, (N, Cin, H, W), dtype=jnp.float32)

    fan_in = Cin * KH * KW
    bound = 1.0 / (fan_in ** 0.5)
    weight = jax.random.uniform(kw, (Cout, Cin, KH, KW), jnp.float32, -bound, bound)
    bias = jax.random.uniform(kb, (Cout,), jnp.float32, -bound, bound)
    gamma = jnp.ones((Cout,), jnp.float32)   # BatchNorm2d default init
    beta = jnp.zeros((Cout,), jnp.float32)

    fwd = jax.jit(conv_block_forward)
    out = jax.block_until_ready(fwd(x, weight, bias, gamma, beta))
    ref = jax.block_until_ready(_reference(x, weight, bias, gamma, beta))

    assert out.shape == (N, Cout, H // 2, W // 2)
    # bf16 MXU operands (f32 accumulation) -> slightly looser tolerance than pure f32.
    assert jnp.allclose(out, ref, rtol=2e-2, atol=2e-2), "mismatch vs pure-JAX reference"

    print("KERNEL_OK")
</pallas_src>

<mosaic_0001>
module attributes {stable_mosaic.version = 11 : i64} {
  func.func @_matmul_stats_kernel(%arg0: i32, %arg1: memref<128x128xbf16, #tpu.memory_space<vmem>>, %arg2: memref<128x128xbf16, #tpu.memory_space<vmem>>, %arg3: memref<128x128xf32, #tpu.memory_space<vmem>>, %arg4: memref<8x128xf32, #tpu.memory_space<vmem>>, %arg5: memref<8x128xf32, #tpu.memory_space<vmem>>) attributes {dimension_semantics = [#tpu.dimension_semantics<parallel>], iteration_bounds = array<i64: 1>, scalar_prefetch = 0 : i64, scratch_operands = 0 : i64, tpu.core_type = #tpu.core_type<tc>, window_params = [{transform_indices = @transform_0, window_bounds = array<i64: 128, 128>}, {pipeline_mode = #tpu.pipeline_mode<synchronous>, transform_indices = @transform_1, window_bounds = array<i64: 128, 128>}, {transform_indices = @transform_2, window_bounds = array<i64: 128, 128>}, {transform_indices = @transform_3, window_bounds = array<i64: 8, 128>}, {transform_indices = @transform_4, window_bounds = array<i64: 8, 128>}]} {
    %c0 = arith.constant 0 : index
    %c0_0 = arith.constant 0 : index
    %0 = vector.load %arg1[%c0, %c0_0] : memref<128x128xbf16, #tpu.memory_space<vmem>>, vector<128x128xbf16>
    %c0_1 = arith.constant 0 : index
    %c0_2 = arith.constant 0 : index
    %1 = vector.load %arg2[%c0_1, %c0_2] : memref<128x128xbf16, #tpu.memory_space<vmem>>, vector<128x128xbf16>
    %cst = arith.constant dense<0.000000e+00> : vector<128x128xf32>
    %2 = tpu.matmul %0, %1, %cst {dimension_numbers = #tpu.dot_dimension_numbers<[1], [0], [0], [1], [0, 0, 1, 1], [], []>} : vector<128x128xbf16>, vector<128x128xbf16>, vector<128x128xf32> -> vector<128x128xf32>
    %c0_3 = arith.constant 0 : index
    %c0_4 = arith.constant 0 : index
    %3 = vector.load %arg3[%c0_3, %c0_4] : memref<128x128xf32, #tpu.memory_space<vmem>>, vector<128x128xf32>
    tpu.vector_store %arg3[%c0_3, %c0_4], %2 {strides = array<i32>} : memref<128x128xf32, #tpu.memory_space<vmem>>, vector<128x128xf32>,
    %cst_5 = arith.constant 1.000000e+00 : f32
    %4 = vector.broadcast %cst_5 : f32 to vector<8x128xf32>
    %cst_6 = arith.constant dense<0.000000e+00> : vector<8x128xf32>
    %5 = tpu.matmul %4, %2, %cst_6 {dimension_numbers = #tpu.dot_dimension_numbers<[1], [0], [0], [1], [0, 0, 1, 1], [], []>} : vector<8x128xf32>, vector<128x128xf32>, vector<8x128xf32> -> vector<8x128xf32>
    %c0_7 = arith.constant 0 : index
    %c0_8 = arith.constant 0 : index
    %6 = vector.load %arg4[%c0_7, %c0_8] : memref<8x128xf32, #tpu.memory_space<vmem>>, vector<8x128xf32>
    tpu.vector_store %arg4[%c0_7, %c0_8], %5 {strides = array<i32>} : memref<8x128xf32, #tpu.memory_space<vmem>>, vector<8x128xf32>,
    %7 = arith.mulf %2, %2 : vector<128x128xf32>
    %cst_9 = arith.constant dense<0.000000e+00> : vector<8x128xf32>
    %8 = tpu.matmul %4, %7, %cst_9 {dimension_numbers = #tpu.dot_dimension_numbers<[1], [0], [0], [1], [0, 0, 1, 1], [], []>} : vector<8x128xf32>, vector<128x128xf32>, vector<8x128xf32> -> vector<8x128xf32>
    %c0_10 = arith.constant 0 : index
    %c0_11 = arith.constant 0 : index
    %9 = vector.load %arg5[%c0_10, %c0_11] : memref<8x128xf32, #tpu.memory_space<vmem>>, vector<8x128xf32>
    tpu.vector_store %arg5[%c0_10, %c0_11], %8 {strides = array<i32>} : memref<8x128xf32, #tpu.memory_space<vmem>>, vector<8x128xf32>,
    return
  }
  func.func @transform_0(%arg0: i32) -> (i32, i32) {
    %c0_i32 = arith.constant 0 : i32
    %c0_i32_0 = arith.constant 0 : i32
    return %arg0, %c0_i32 : i32, i32
  }
  func.func @transform_1(%arg0: i32) -> (i32, i32) {
    %c0_i32 = arith.constant 0 : i32
    %c0_i32_0 = arith.constant 0 : i32
    %c0_i32_1 = arith.constant 0 : i32
    return %c0_i32, %c0_i32_0 : i32, i32
  }
  func.func @transform_2(%arg0: i32) -> (i32, i32) {
    %c0_i32 = arith.constant 0 : i32
    %c0_i32_0 = arith.constant 0 : i32
    return %arg0, %c0_i32 : i32, i32
  }
  func.func @transform_3(%arg0: i32) -> (i32, i32) {
    %c0_i32 = arith.constant 0 : i32
    %c0_i32_0 = arith.constant 0 : i32
    return %arg0, %c0_i32 : i32, i32
  }
  func.func @transform_4(%arg0: i32) -> (i32, i32) {
    %c0_i32 = arith.constant 0 : i32
    %c0_i32_0 = arith.constant 0 : i32
    return %arg0, %c0_i32 : i32, i32
  }
}

module attributes {stable_mosaic.version = 11 : i64} {
  func.func @_bn_relu_kernel(%arg0: i32, %arg1: memref<128x128xf32, #tpu.memory_space<vmem>>, %arg2: memref<1x128xf32, #tpu.memory_space<vmem>>, %arg3: memref<1x128xf32, #tpu.memory_space<vmem>>, %arg4: memref<128x128xf32, #tpu.memory_space<vmem>>) attributes {dimension_semantics = [#tpu.dimension_semantics<parallel>], iteration_bounds = array<i64: 1>, scalar_prefetch = 0 : i64, scratch_operands = 0 : i64, tpu.core_type = #tpu.core_type<tc>, window_params = [{transform_indices = @transform_0, window_bounds = array<i64: 128, 128>}, {pipeline_mode = #tpu.pipeline_mode<synchronous>, transform_indices = @transform_1, window_bounds = array<i64: 1, 128>}, {pipeline_mode = #tpu.pipeline_mode<synchronous>, transform_indices = @transform_2, window_bounds = array<i64: 1, 128>}, {transform_indices = @transform_3, window_bounds = array<i64: 128, 128>}]} {
    %c0 = arith.constant 0 : index
    %c0_0 = arith.constant 0 : index
    %0 = vector.load %arg1[%c0, %c0_0] : memref<128x128xf32, #tpu.memory_space<vmem>>, vector<128x128xf32>
    %c0_1 = arith.constant 0 : index
    %c0_2 = arith.constant 0 : index
    %1 = vector.load %arg2[%c0_1, %c0_2] : memref<1x128xf32, #tpu.memory_space<vmem>>, vector<1x128xf32>
    %2 = vector.broadcast %1 : vector<1x128xf32> to vector<128x128xf32>
    %3 = arith.mulf %0, %2 : vector<128x128xf32>
    %c0_3 = arith.constant 0 : index
    %c0_4 = arith.constant 0 : index
    %4 = vector.load %arg3[%c0_3, %c0_4] : memref<1x128xf32, #tpu.memory_space<vmem>>, vector<1x128xf32>
    %5 = vector.broadcast %4 : vector<1x128xf32> to vector<128x128xf32>
    %6 = arith.addf %3, %5 : vector<128x128xf32>
    %cst = arith.constant 0.000000e+00 : f32
    %7 = vector.broadcast %cst : f32 to vector<128x128xf32>
    %8 = arith.maximumf %6, %7 : vector<128x128xf32>
    %c0_5 = arith.constant 0 : index
    %c0_6 = arith.constant 0 : index
    %9 = vector.load %arg4[%c0_5, %c0_6] : memref<128x128xf32, #tpu.memory_space<vmem>>, vector<128x128xf32>
    tpu.vector_store %arg4[%c0_5, %c0_6], %8 {strides = array<i32>} : memref<128x128xf32, #tpu.memory_space<vmem>>, vector<128x128xf32>,
    return
  }
  func.func @transform_0(%arg0: i32) -> (i32, i32) {
    %c0_i32 = arith.constant 0 : i32
    %c0_i32_0 = arith.constant 0 : i32
    return %arg0, %c0_i32 : i32, i32
  }
  func.func @transform_1(%arg0: i32) -> (i32, i32) {
    %c0_i32 = arith.constant 0 : i32
    %c0_i32_0 = arith.constant 0 : i32
    %c0_i32_1 = arith.constant 0 : i32
    return %c0_i32, %c0_i32_0 : i32, i32
  }
  func.func @transform_2(%arg0: i32) -> (i32, i32) {
    %c0_i32 = arith.constant 0 : i32
    %c0_i32_0 = arith.constant 0 : i32
    %c0_i32_1 = arith.constant 0 : i32
    return %c0_i32, %c0_i32_0 : i32, i32
  }
  func.func @transform_3(%arg0: i32) -> (i32, i32) {
    %c0_i32 = arith.constant 0 : i32
    %c0_i32_0 = arith.constant 0 : i32
    return %arg0, %c0_i32 : i32, i32
  }
}

</mosaic_0001>

<bundles_post_ra>
// kernel: conv_block_forward.3
= control target key start
LH: loop header
LB: loop body
LE: loop exit
PB: predicated region body
PF: predicated region fallthrough
CT: control target
= control target key end

     0   :  { %s254_s0 = inlined_call_operand.vmem [shape: f32[128,128], index: 0, kind: input, shape index: {}]   ;;  %s255_s1 = inlined_call_operand.vmem [shape: f32[1,128], index: 1, kind: input, shape index: {}]   ;;  %s256_s2 = inlined_call_operand.vmem [shape: f32[1,128], index: 2, kind: input, shape index: {}]   ;;  %s257_s3 = inlined_call_operand.vmem [shape: f32[128,128], index: 3, kind: output, shape index: {}]  }
   0x1   :  { %v14_v0 = vld [vmem:[%s254_s0] sm:$0xff]  ;;  %v15_v4 = vld [vmem:[%s254_s0 + $0x8] sm:$0xff]  ;;  %v16_v5 = vld [vmem:[%s254_s0 + $0x10] sm:$0xff] }
   0x2   :  { %v112_v1 = vld [vmem:[%s255_s1] ss:$0 sm:$0xff]  ;;  %v17_v6 = vld [vmem:[%s254_s0 + $0x18] sm:$0xff]  ;;  %v19_v11 = vld [vmem:[%s254_s0 + $0x28] sm:$0xff] }
   0x3   :  { %v143_v2 = vld [vmem:[%s256_s2] ss:$0 sm:$0xff]  ;;  %v37_v3 = vmul.f32 %v112_v1, %v14_v0  ;;  %v38_v7 = vmul.f32 %v112_v1, %v15_v4  ;;  %v39_v8 = vmul.f32 %v112_v1, %v16_v5  ;;  %v40_v9 = vmul.f32 %v112_v1, %v17_v6  ;;  %v20_v12 = vld [vmem:[%s254_s0 + $0x30] sm:$0xff]  ;;  %v21_v17 = vld [vmem:[%s254_s0 + $0x38] sm:$0xff] }
   0x4   :  { %v18_v10 = vld [vmem:[%s254_s0 + $0x20] sm:$0xff]  ;;  %v42_v15 = vmul.f32 %v112_v1, %v19_v11  ;;  %v43_v16 = vmul.f32 %v112_v1, %v20_v12  ;;  %v44_v21 = vmul.f32 %v112_v1, %v21_v17  ;;  %v23_v27 = vld [vmem:[%s254_s0 + $0x48] sm:$0xff]  ;;  %v24_v28 = vld [vmem:[%s254_s0 + $0x50] sm:$0xff] }
   0x5   :  { %v60_v13 = vadd.f32 %v143_v2, %v37_v3  ;;  %v41_v14 = vmul.f32 %v112_v1, %v18_v10  ;;  %v61_v18 = vadd.f32 %v143_v2, %v38_v7  ;;  %v62_v19 = vadd.f32 %v143_v2, %v39_v8  ;;  %v22_v22 = vld [vmem:[%s254_s0 + $0x40] sm:$0xff]  ;;  %v25_v29 = vld [vmem:[%s254_s0 + $0x58] sm:$0xff]  ;;  %v27_v35 = vld [vmem:[%s254_s0 + $0x68] sm:$0xff] }
   0x6   :  { %v63_v20 = vadd.f32 %v143_v2, %v40_v9  ;;  %v65_v25 = vadd.f32 %v143_v2, %v42_v15  ;;  %v66_v26 = vadd.f32 %v143_v2, %v43_v16  ;;  %v67_v33 = vadd.f32 %v143_v2, %v44_v21  ;;  %v26_v34 = vld [vmem:[%s254_s0 + $0x60] sm:$0xff]  ;;  %v28_v36 = vld [vmem:[%s254_s0 + $0x70] sm:$0xff]  ;;  %v29_v41 = vld [vmem:[%s254_s0 + $0x78] sm:$0xff] }
   0x7   :  { %v76_v23 = vmax.f32 %v60_v13, 0.0  ;;  %v64_v24 = vadd.f32 %v143_v2, %v41_v14  ;;  %v77_v30 = vmax.f32 %v61_v18, 0.0  ;;  %v78_v31 = vmax.f32 %v62_v19, 0.0 }
   0x8   :  { %v79_v32 = vmax.f32 %v63_v20, 0.0  ;;  %v81_v38 = vmax.f32 %v65_v25, 0.0  ;;  %v82_v39 = vmax.f32 %v66_v26, 0.0  ;;  %v45_v40 = vmul.f32 %v112_v1, %v22_v22 }
   0x9   :  { %92 = vst [vmem:[%s257_s3] sm:$0xff] %v76_v23  ;;  %v80_v37 = vmax.f32 %v64_v24, 0.0  ;;  %93 = vst [vmem:[%s257_s3 + $0x8] sm:$0xff] %v77_v30  ;;  %v83_v42 = vmax.f32 %v67_v33, 0.0  ;;  %v46_v43 = vmul.f32 %v112_v1, %v23_v27  ;;  %v47_v44 = vmul.f32 %v112_v1, %v24_v28 }
   0xa   :  { %94 = vst [vmem:[%s257_s3 + $0x10] sm:$0xff] %v78_v31  ;;  %95 = vst [vmem:[%s257_s3 + $0x18] sm:$0xff] %v79_v32  ;;  %v48_v45 = vmul.f32 %v112_v1, %v25_v29  ;;  %v68_v46 = vadd.f32 %v143_v2, %v45_v40  ;;  %v49_v47 = vmul.f32 %v112_v1, %v26_v34 }
   0xb   :  { %96 = vst [vmem:[%s257_s3 + $0x20] sm:$0xff] %v80_v37  ;;  %97 = vst [vmem:[%s257_s3 + $0x28] sm:$0xff] %v81_v38  ;;  %v50_v48 = vmul.f32 %v112_v1, %v27_v35  ;;  %v51_v49 = vmul.f32 %v112_v1, %v28_v36  ;;  %v69_v50 = vadd.f32 %v143_v2, %v46_v43 }
   0xc   :  { %98 = vst [vmem:[%s257_s3 + $0x30] sm:$0xff] %v82_v39  ;;  %99 = vst [vmem:[%s257_s3 + $0x38] sm:$0xff] %v83_v42  ;;  %v70_v51 = vadd.f32 %v143_v2, %v47_v44  ;;  %v71_v52 = vadd.f32 %v143_v2, %v48_v45  ;;  %v52_v53 = vmul.f32 %v112_v1, %v29_v41  ;;  %v84_v54 = vmax.f32 %v68_v46, 0.0 }
   0xd   :  { %v72_v55 = vadd.f32 %v143_v2, %v49_v47  ;;  %v73_v56 = vadd.f32 %v143_v2, %v50_v48  ;;  %v74_v57 = vadd.f32 %v143_v2, %v51_v49  ;;  %v85_v58 = vmax.f32 %v69_v50, 0.0 }
   0xe   :  { %v86_v59 = vmax.f32 %v70_v51, 0.0  ;;  %v87_v60 = vmax.f32 %v71_v52, 0.0  ;;  %v75_v61 = vadd.f32 %v143_v2, %v52_v53  ;;  %100 = vst [vmem:[%s257_s3 + $0x40] sm:$0xff] %v84_v54 }
   0xf   :  { %v88_v62 = vmax.f32 %v72_v55, 0.0  ;;  %v89_v63 = vmax.f32 %v73_v56, 0.0  ;;  %v90_v0 = vmax.f32 %v74_v57, 0.0  ;;  %101 = vst [vmem:[%s257_s3 + $0x48] sm:$0xff] %v85_v58 }
  0x10   :  { %102 = vst [vmem:[%s257_s3 + $0x50] sm:$0xff] %v86_v59  ;;  %103 = vst [vmem:[%s257_s3 + $0x58] sm:$0xff] %v87_v60  ;;  %v91_v1 = vmax.f32 %v75_v61, 0.0 }
  0x11   :  { %104 = vst [vmem:[%s257_s3 + $0x60] sm:$0xff] %v88_v62  ;;  %105 = vst [vmem:[%s257_s3 + $0x68] sm:$0xff] %v89_v63 }
  0x12   :  { %106 = vst [vmem:[%s257_s3 + $0x70] sm:$0xff] %v90_v0  ;;  %107 = vst [vmem:[%s257_s3 + $0x78] sm:$0xff] %v91_v1 }

// kernel: conv_block_forward.2
= control target key start
LH: loop header
LB: loop body
LE: loop exit
PB: predicated region body
PF: predicated region fallthrough
CT: control target
= control target key end

     0   :  { %v662_v16 = vmov 0.0|0.0   ;;  %vm663_vm0 = vmmov 0   ;;  %v664_v17 = vmov 0.0   ;;  %s809_s1 = inlined_call_operand.vmem [shape: bf16[128,128], index: 1, kind: input, shape index: {}]   ;;  %s810_s0 = inlined_call_operand.vmem [shape: bf16[128,128], index: 0, kind: input, shape index: {}]   ;;  %s811_s2 = inlined_call_operand.vmem [shape: f32[128,128], index: 2, kind: output, shape index: {0}]   ;;  %s812_s3 = inlined_call_operand.vmem [shape: f32[8,128], index: 3, kind: output, shape index: {1}]   ;;  %s813_s4 = inlined_call_operand.vmem [shape: f32[8,128], index: 4, kind: output, shape index: {2}]  }
   0x1   :  { %v646_v0 = vld [vmem:[%s809_s1] sm:$0xff]   ;;  %v647_v1 = vld [vmem:[%s809_s1 + $0x8] sm:$0xff]   ;;  %v648_v2 = vld [vmem:[%s809_s1 + $0x10] sm:$0xff]   ;;  %594 = vmatprep.subr.bf16.mxu1 %v662_v16  ;;  %556 = vmatprep.mubr.msk.f32.mxu1 %vm663_vm0, %v664_v17 }
   0x2   :  { %492 = vmatprep.subr.bf16.mxu0 %v646_v0  ;;  %v649_v3 = vld [vmem:[%s809_s1 + $0x18] sm:$0xff]   ;;  %v654_v4 = vld [vmem:[%s810_s0] sm:$0xff]   ;;  %v651_v6 = vld [vmem:[%s809_s1 + $0x28] sm:$0xff]  }
   0x3   :  { %493 = vmatpush3.bf16.msra.mxu0 %v646_v0  ;;  %508 = vmatprep.mubr.bf16.mxu0 %v654_v4  ;;  %v650_v5 = vld [vmem:[%s809_s1 + $0x20] sm:$0xff]   ;;  %v652_v7 = vld [vmem:[%s809_s1 + $0x30] sm:$0xff]   ;;  %v653_v8 = vld [vmem:[%s809_s1 + $0x38] sm:$0xff]  }
   0x4   :  { %494 = vmatprep.subr.bf16.mxu0 %v647_v1  ;;  %v655_v9 = vld [vmem:[%s810_s0 + $0x8] sm:$0xff]   ;;  %v656_v10 = vld [vmem:[%s810_s0 + $0x10] sm:$0xff]   ;;  %v657_v11 = vld [vmem:[%s810_s0 + $0x18] sm:$0xff]  }
   0x5   :  { %v658_v12 = vld [vmem:[%s810_s0 + $0x20] sm:$0xff]   ;;  %v659_v13 = vld [vmem:[%s810_s0 + $0x28] sm:$0xff]   ;;  %v660_v14 = vld [vmem:[%s810_s0 + $0x30] sm:$0xff]  }
   0x6   :  { %v661_v15 = vld [vmem:[%s810_s0 + $0x38] sm:$0xff]  }
   0x7   :  { %495 = vmatpush3.bf16.msra.mxu0 %v647_v1 }
   0x8   :  { %496 = vmatprep.subr.bf16.mxu0 %v648_v2 }
   0xb   :  { %497 = vmatpush3.bf16.msra.mxu0 %v648_v2  ;;  %v665_v2 = vmov 1.0  }
   0xc   :  { %498 = vmatprep.subr.bf16.mxu0 %v649_v3 }
   0xf   :  { %499 = vmatpush3.bf16.msra.mxu0 %v649_v3 }
  0x10   :  { %500 = vmatprep.subr.bf16.mxu0 %v650_v5 }
  0x13   :  { %501 = vmatpush3.bf16.msra.mxu0 %v650_v5 }
  0x14   :  { %502 = vmatprep.subr.bf16.mxu0 %v651_v6 }
  0x17   :  { %503 = vmatpush3.bf16.msra.mxu0 %v651_v6 }
  0x18   :  { %504 = vmatprep.subr.bf16.mxu0 %v652_v7 }
  0x1b   :  { %505 = vmatpush3.bf16.msra.mxu0 %v652_v7 }
  0x1c   :  { %506 = vmatprep.subr.bf16.mxu0 %v653_v8 }
  0x1f   :  { %507 = vmatpush3.bf16.msra.mxu0 %v653_v8 }
  0x20   :  { %618 = vmatprep.subr.bf16.mxu0 %v662_v16 }
  0x22   :  { %509 = vmatmul.mubr.bf16.vlgmr.msra.gmra.mrb[0].mxu0 %v655_v9 }
  0x23   :  { %512 = vmatprep.mubr.bf16.mxu0 %v656_v10 }
  0x2a   :  { %513 = vmatmul.mubr.bf16.gmra.mrb[4].mxu0 %v657_v11 }
  0x2b   :  { %516 = vmatprep.mubr.bf16.mxu0 %v658_v12 }
  0x32   :  { %517 = vmatmul.mubr.bf16.gmra.mrb[8].mxu0 %v659_v13 }
  0x33   :  { %520 = vmatprep.mubr.bf16.mxu0 %v660_v14 }
  0x3a   :  { %521 = vmatmul.mubr.bf16.gmra.mrb[12].mxu0 %v661_v15 }
  0x3b   :  { %591 = vmatprep.mubr.msk.f32.mxu0 %vm663_vm0, %v664_v17 }
  0xf5   :  { %v510_v18 = vpop.f32.mrb[0].mxu0 }
  0xf6   :  { %242 = vst [vmem:[%s811_s2 + $0x10] sm:$0xff] %v510_v18  ;;  %v177_v19 = vpop.f32.mrb[1].mxu0  ;;  %v329_v21 = vmul.f32 %v510_v18, %v510_v18 }
  0xf7   :  { %240 = vst [vmem:[%s811_s2] sm:$0xff] %v177_v19  ;;  %v511_v20 = vpop.f32.mrb[2].mxu0  ;;  %v327_v25 = vmul.f32 %v177_v19, %v177_v19 }
  0xf8   :  { %243 = vst [vmem:[%s811_s2 + $0x18] sm:$0xff] %v511_v20  ;;  %v598_v22 = vpack.c.bf16 %v511_v20, %v510_v18  ;;  %v330_v23 = vmul.f32 %v511_v20, %v511_v20  ;;  %v180_v24 = vpop.f32.mrb[3].mxu0 }
  0xf9   :  { %241 = vst [vmem:[%s811_s2 + $0x8] sm:$0xff] %v180_v24  ;;  %v328_v26 = vmul.f32 %v180_v24, %v180_v24  ;;  %v595_v27 = vpack.c.bf16 %v180_v24, %v177_v19 }
  0xfa   :  { %v622_v28 = vpack.c.bf16 %v330_v23, %v329_v21 }
  0xfb   :  { %v619_v29 = vpack.c.bf16 %v328_v26, %v327_v25  ;;  %596 = vmatpush3.bf16.msra.mxu1 %v595_v27 }
  0xfc   :  { %597 = vmatprep.subr.bf16.mxu1 %v662_v16 }
  0xfd   :  { %v514_v30 = vpop.f32.mrb[4].mxu0  ;;  %620 = vmatpush3.bf16.msra.mxu0 %v619_v29 }
  0xfe   :  { %246 = vst [vmem:[%s811_s2 + $0x30] sm:$0xff] %v514_v30  ;;  %v193_v31 = vpop.f32.mrb[5].mxu0  ;;  %621 = vmatprep.subr.bf16.mxu0 %v662_v16  ;;  %v333_v33 = vmul.f32 %v514_v30, %v514_v30 }
  0xff   :  { %244 = vst [vmem:[%s811_s2 + $0x20] sm:$0xff] %v193_v31  ;;  %v515_v32 = vpop.f32.mrb[6].mxu0  ;;  %599 = vmatpush3.bf16.msra.mxu1 %v598_v22  ;;  %v331_v37 = vmul.f32 %v193_v31, %v193_v31 }
 0x100   :  { %247 = vst [vmem:[%s811_s2 + $0x38] sm:$0xff] %v515_v32  ;;  %v604_v34 = vpack.c.bf16 %v515_v32, %v514_v30  ;;  %v334_v35 = vmul.f32 %v515_v32, %v515_v32  ;;  %v196_v36 = vpop.f32.mrb[7].mxu0  ;;  %600 = vmatprep.subr.bf16.mxu1 %v662_v16 }
 0x101   :  { %245 = vst [vmem:[%s811_s2 + $0x28] sm:$0xff] %v196_v36  ;;  %v601_v38 = vpack.c.bf16 %v196_v36, %v193_v31  ;;  %v332_v39 = vmul.f32 %v196_v36, %v196_v36  ;;  %623 = vmatpush3.bf16.msra.mxu0 %v622_v28 }
 0x102   :  { %v628_v40 = vpack.c.bf16 %v334_v35, %v333_v33  ;;  %624 = vmatprep.subr.bf16.mxu0 %v662_v16 }
 0x103   :  { %v625_v41 = vpack.c.bf16 %v332_v39, %v331_v37  ;;  %602 = vmatpush3.bf16.msra.mxu1 %v601_v38 }
 0x104   :  { %603 = vmatprep.subr.bf16.mxu1 %v662_v16 }
 0x105   :  { %v518_v42 = vpop.f32.mrb[8].mxu0  ;;  %626 = vmatpush3.bf16.msra.mxu0 %v625_v41 }
 0x106   :  { %250 = vst [vmem:[%s811_s2 + $0x50] sm:$0xff] %v518_v42  ;;  %v209_v43 = vpop.f32.mrb[9].mxu0  ;;  %627 = vmatprep.subr.bf16.mxu0 %v662_v16  ;;  %v337_v45 = vmul.f32 %v518_v42, %v518_v42 }
 0x107   :  { %248 = vst [vmem:[%s811_s2 + $0x40] sm:$0xff] %v209_v43  ;;  %v519_v44 = vpop.f32.mrb[10].mxu0  ;;  %605 = vmatpush3.bf16.msra.mxu1 %v604_v34  ;;  %v335_v49 = vmul.f32 %v209_v43, %v209_v43 }
 0x108   :  { %251 = vst [vmem:[%s811_s2 + $0x58] sm:$0xff] %v519_v44  ;;  %v610_v46 = vpack.c.bf16 %v519_v44, %v518_v42  ;;  %v338_v47 = vmul.f32 %v519_v44, %v519_v44  ;;  %v212_v48 = vpop.f32.mrb[11].mxu0  ;;  %606 = vmatprep.subr.bf16.mxu1 %v662_v16 }
 0x109   :  { %249 = vst [vmem:[%s811_s2 + $0x48] sm:$0xff] %v212_v48  ;;  %v607_v50 = vpack.c.bf16 %v212_v48, %v209_v43  ;;  %v336_v51 = vmul.f32 %v212_v48, %v212_v48  ;;  %629 = vmatpush3.bf16.msra.mxu0 %v628_v40 }
 0x10a   :  { %v634_v52 = vpack.c.bf16 %v338_v47, %v337_v45  ;;  %630 = vmatprep.subr.bf16.mxu0 %v662_v16 }
 0x10b   :  { %v631_v53 = vpack.c.bf16 %v336_v51, %v335_v49  ;;  %608 = vmatpush3.bf16.msra.mxu1 %v607_v50 }
 0x10c   :  { %609 = vmatprep.subr.bf16.mxu1 %v662_v16 }
 0x10d   :  { %v522_v54 = vpop.f32.mrb[12].mxu0  ;;  %632 = vmatpush3.bf16.msra.mxu0 %v631_v53 }
 0x10e   :  { %254 = vst [vmem:[%s811_s2 + $0x70] sm:$0xff] %v522_v54  ;;  %v225_v55 = vpop.f32.mrb[13].mxu0  ;;  %633 = vmatprep.subr.bf16.mxu0 %v662_v16  ;;  %v341_v57 = vmul.f32 %v522_v54, %v522_v54 }
 0x10f   :  { %252 = vst [vmem:[%s811_s2 + $0x60] sm:$0xff] %v225_v55  ;;  %v523_v56 = vpop.f32.mrb[14].mxu0  ;;  %611 = vmatpush3.bf16.msra.mxu1 %v610_v46  ;;  %v339_v61 = vmul.f32 %v225_v55, %v225_v55 }
 0x110   :  { %255 = vst [vmem:[%s811_s2 + $0x78] sm:$0xff] %v523_v56  ;;  %v616_v58 = vpack.c.bf16 %v523_v56, %v522_v54  ;;  %v342_v59 = vmul.f32 %v523_v56, %v523_v56  ;;  %v228_v60 = vpop.f32.mrb[15].mxu0  ;;  %612 = vmatprep.subr.bf16.mxu1 %v662_v16 }
 0x111   :  { %253 = vst [vmem:[%s811_s2 + $0x68] sm:$0xff] %v228_v60  ;;  %v613_v62 = vpack.c.bf16 %v228_v60, %v225_v55  ;;  %v340_v63 = vmul.f32 %v228_v60, %v228_v60  ;;  %635 = vmatpush3.bf16.msra.mxu0 %v634_v52 }
 0x112   :  { %v640_v0 = vpack.c.bf16 %v342_v59, %v341_v57  ;;  %636 = vmatprep.subr.bf16.mxu0 %v662_v16 }
 0x113   :  { %v637_v1 = vpack.c.bf16 %v340_v63, %v339_v61  ;;  %614 = vmatpush3.bf16.msra.mxu1 %v613_v62 }
 0x114   :  { %615 = vmatprep.subr.bf16.mxu1 %v662_v16 }
 0x115   :  { %638 = vmatpush3.bf16.msra.mxu0 %v637_v1 }
 0x116   :  { %639 = vmatprep.subr.bf16.mxu0 %v662_v16 }
 0x117   :  { %617 = vmatpush3.bf16.msra.mxu1 %v616_v58 }
 0x119   :  { %641 = vmatpush3.bf16.msra.mxu0 %v640_v0 }
 0x11a   :  { %557 = vmatmul.mubr.f32.vlgmr.msra.gmra.mrb[0].mxu1 %v665_v2 }
 0x11c   :  { %592 = vmatmul.mubr.f32.vlgmr.msra.gmra.mrb[16].mxu0 %v665_v2 }
 0x1ed   :  { %v322_v3 = vpop.f32.mrb[0].mxu1 }
 0x1ee   :  { %326 = vst [vmem:[%s812_s3] sm:$0xff] %v322_v3  ;;  %v558_v4 = vpop.f32.mrb[1].mxu1 }
 0x1ef   :  { %v409_v5 = vpop.f32.mrb[16].mxu0 }
 0x1f0   :  { %413 = vst [vmem:[%s813_s4] sm:$0xff] %v409_v5  ;;  %v593_v6 = vpop.f32.mrb[17].mxu0 }

</bundles_post_ra>
